<compile_context>
chip_gen: v7x
topology: tpu7x:2x2x1
jax: 0.10.0
libtpu: 0.0.40
codegen_flags: <defaults>
</compile_context>

<pallas_src>
import jax
import jax.numpy as jnp
from jax.experimental import pallas as pl
from jax.experimental.pallas import tpu as pltpu


_LANE = 128


def _lambda_kernel(x_ref, o_ref):
    # lambda_fn(x) = x / 255 * 2 - 1; dtype casts fused into the kernel.
    # Python-float constants fold into the ops -> nothing captured.
    x = x_ref[...].astype(jnp.float32)
    o_ref[...] = (x * (2.0 / 255.0) - 1.0).astype(o_ref.dtype)


def _device_kind() -> str:
    try:
        return jax.devices()[0].device_kind.lower()
    except Exception:  # pragma: no cover - CPU / AOT fallback
        return ""


def _choose_tile_rows(rows: int) -> int:
    """Pick the row-tile for a (rows, 128) slab, per TPU generation."""
    kind = _device_kind()
    if "v7" in kind:
        base, n_cores = 8192, 2      # 4 MiB f32 out/block; <=16 MiB pipelined
    elif "v6" in kind or "v5p" in kind:
        base, n_cores = 4096, 1      # <=8 MiB pipelined, under 32 MiB default
    else:
        base, n_cores = 2048, 1      # v5e / unknown: under the 16 MiB default
    if n_cores > 1 and rows > 2048:
        # Dual-TensorCore chip: make sure a big slab yields >=1 block per core
        # so the ("parallel",) grid keeps both cores' DMA paths busy.
        per_core = -(-rows // n_cores)
        per_core = -(-per_core // 8) * 8
        base = min(base, per_core)
    # If the whole slab fits in one tile, use the full extent (a full-dim
    # block has no (8,128) divisibility requirement); otherwise `base` is a
    # multiple of 8 and the ragged last block is handled by Pallas.
    return min(base, rows)


def lambda_module(x: jax.Array, out_dtype=jnp.float32) -> jax.Array:
    """Pallas TPU version of LambdaModule(lambda x: x / 255 * 2 - 1).

    Accepts any real dtype (e.g. uint8 images or float32). Returns
    `out_dtype` (float32 by default; bf16 is an opt-in, lower-traffic option).
    """
    orig_shape = x.shape
    n = x.size
    out_dtype = jnp.dtype(out_dtype)
    x_flat = jnp.ravel(x)

    if n % _LANE == 0:
        # Common case: lane-dense (rows, 128) slab, zero padding.
        rows = n // _LANE
        tile_rows = _choose_tile_rows(rows)
        x2d = x_flat.reshape(rows, _LANE)
        grid = (pl.cdiv(rows, tile_rows),)
        block = (tile_rows, _LANE)
        index_map = lambda i: (i, 0)
    else:
        # Rare ragged case: present the flat array as one (1, n) lane-major
        # row and tile along lanes.  Pallas masks the ragged final block, so
        # there is still no pad / slice HBM round-trip (sublane utilisation is
        # lower here, but this path only triggers for odd element counts).
        tile_e = min(_choose_tile_rows(pl.cdiv(n, _LANE)) * _LANE, n)
        x2d = x_flat.reshape(1, n)
        grid = (pl.cdiv(n, tile_e),)
        block = (1, tile_e)
        index_map = lambda i: (0, i)

    extra_kwargs = {}
    if x2d.dtype == out_dtype:
        # Same shape & dtype in/out: let XLA reuse the input HBM buffer.
        extra_kwargs["input_output_aliases"] = {0: 0}

    out2d = pl.pallas_call(
        _lambda_kernel,
        out_shape=jax.ShapeDtypeStruct(x2d.shape, out_dtype),
        grid_spec=pltpu.PrefetchScalarGridSpec(
            num_scalar_prefetch=0,
            grid=grid,
            in_specs=[pl.BlockSpec(block, index_map)],
            out_specs=pl.BlockSpec(block, index_map),
        ),
        compiler_params=pltpu.CompilerParams(
            dimension_semantics=("parallel",),
        ),
        cost_estimate=pl.CostEstimate(
            flops=2 * n,
            transcendentals=0,
            bytes_accessed=n * x.dtype.itemsize + n * out_dtype.itemsize,
        ),
        **extra_kwargs,
    )(x2d)

    return out2d.reshape(orig_shape)


if __name__ == "__main__":
    key = jax.random.PRNGKey(0)
    k1, k2 = jax.random.split(key)

    # NCHW input consistent with an image-transform module: batch=2, C=4, 16x16.
    x = jax.random.uniform(k1, (2, 4, 16, 16), dtype=jnp.float32,
                           minval=0.0, maxval=255.0)
    y = jax.block_until_ready(jax.jit(lambda_module)(x))
    y_ref = x / 255.0 * 2.0 - 1.0
    assert y.shape == x.shape and y.dtype == jnp.float32
    assert jnp.allclose(y, y_ref, atol=1e-6), "mismatch vs reference (main path)"

    # Ragged path: element count (150) is not a multiple of 128 -> no pad/slice.
    x2 = jax.random.uniform(k2, (2, 3, 5, 5), dtype=jnp.float32,
                            minval=0.0, maxval=255.0)
    y2 = jax.block_until_ready(jax.jit(lambda_module)(x2))
    assert jnp.allclose(y2, x2 / 255.0 * 2.0 - 1.0, atol=1e-6), \
        "mismatch vs reference (ragged path)"

    # Opt-in bf16 output variant (lower write traffic).
    y3 = jax.block_until_ready(lambda_module(x, out_dtype=jnp.bfloat16))
    assert y3.dtype == jnp.bfloat16
    assert jnp.allclose(y3.astype(jnp.float32), y_ref, atol=1e-2), \
        "mismatch vs reference (bf16 path)"

    print("KERNEL_OK")
</pallas_src>

<mosaic_0001>
module attributes {stable_mosaic.version = 11 : i64} {
  func.func @_lambda_kernel(%arg0: i32, %arg1: memref<16x128xf32, #tpu.memory_space<vmem>>, %arg2: memref<16x128xf32, #tpu.memory_space<vmem>>) attributes {dimension_semantics = [#tpu.dimension_semantics<parallel>], iteration_bounds = array<i64: 1>, scalar_prefetch = 0 : i64, scratch_operands = 0 : i64, tpu.core_type = #tpu.core_type<tc>, window_params = [{transform_indices = @transform_0, window_bounds = array<i64: 16, 128>}, {transform_indices = @transform_1, window_bounds = array<i64: 16, 128>}]} {
    %c0 = arith.constant 0 : index
    %c0_0 = arith.constant 0 : index
    %0 = vector.load %arg1[%c0, %c0_0] : memref<16x128xf32, #tpu.memory_space<vmem>>, vector<16x128xf32>
    %cst = arith.constant 0.00784313772 : f32
    %1 = vector.broadcast %cst : f32 to vector<16x128xf32>
    %2 = arith.mulf %0, %1 : vector<16x128xf32>
    %cst_1 = arith.constant 1.000000e+00 : f32
    %3 = vector.broadcast %cst_1 : f32 to vector<16x128xf32>
    %4 = arith.subf %2, %3 : vector<16x128xf32>
    %c0_2 = arith.constant 0 : index
    %c0_3 = arith.constant 0 : index
    %5 = vector.load %arg2[%c0_2, %c0_3] : memref<16x128xf32, #tpu.memory_space<vmem>>, vector<16x128xf32>
    tpu.vector_store %arg2[%c0_2, %c0_3], %4 {strides = array<i32>} : memref<16x128xf32, #tpu.memory_space<vmem>>, vector<16x128xf32>,
    return
  }
  func.func @transform_0(%arg0: i32) -> (i32, i32) {
    %c0_i32 = arith.constant 0 : i32
    %c0_i32_0 = arith.constant 0 : i32
    return %arg0, %c0_i32 : i32, i32
  }
  func.func @transform_1(%arg0: i32) -> (i32, i32) {
    %c0_i32 = arith.constant 0 : i32
    %c0_i32_0 = arith.constant 0 : i32
    return %arg0, %c0_i32 : i32, i32
  }
}

</mosaic_0001>

<bundles_post_ra>
// kernel: lambda_module.1
= control target key start
LH: loop header
LB: loop body
LE: loop exit
PB: predicated region body
PF: predicated region fallthrough
CT: control target
= control target key end

     0   :  { %s44_s0 = inlined_call_operand.vmem [shape: f32[16,128], index: 0, kind: input, shape index: {}, may-alias: {0,1}]   ;;  %s45_s1 = inlined_call_operand.vmem [shape: f32[16,128], index: 1, kind: output, shape index: {}, may-alias: {0,1}]  }
   0x1   :  { %v8_v0 = vld [vmem:[%s44_s0] sm:$0xff]  ;;  %v9_v1 = vld [vmem:[%s44_s0 + $0x8] sm:$0xff] }
   0x2   :  { %v10_v2 = vmul.f32 0.007843138, %v8_v0  ;;  %v11_v3 = vmul.f32 0.007843138, %v9_v1 }
   0x4   :  { %v20_v4 = vadd.f32 -1.0, %v10_v2  ;;  %v21_v5 = vadd.f32 -1.0, %v11_v3 }
   0x6   :  { %14 = vst [vmem:[%s45_s1] sm:$0xff] %v20_v4  ;;  %15 = vst [vmem:[%s45_s1 + $0x8] sm:$0xff] %v21_v5 }

</bundles_post_ra>
